<compile_context>
chip_gen: v7x
topology: tpu7x:2x2x1
jax: 0.10.0
libtpu: 0.0.40
codegen_flags: <defaults>
</compile_context>

<pallas_src>
import math

import jax
import jax.numpy as jnp
from jax import lax
from jax.experimental import pallas as pl
from jax.experimental.pallas import tpu as pltpu

_MIB = 1 << 20


# ----------------------------------------------------------------------------
# helpers
# ----------------------------------------------------------------------------
def _round_up(n: int, m: int) -> int:
    return ((n + m - 1) // m) * m


def _mm(a, b):
    """Full-precision f32 matmul -- only for one-time weight precompute and
    references, never inside the hot kernels."""
    return jnp.dot(a, b, precision=lax.Precision.HIGHEST)


def _itemsize(dt) -> int:
    return jnp.dtype(dt).itemsize


def _vmem_limit_bytes(streamed_bytes: int, resident_bytes: int):
    """Streamed blocks are double-buffered by the auto-pipeline; add headroom
    for Mosaic-internal scratch.  Returns None when the smallest default
    scoped limit (16 MiB on v5e) already covers it.  64 MiB cap is safe on all
    generations (v7x physical VMEM is 64 MiB; v5e/v6e have 128 MiB).
    """
    need = 2 * streamed_bytes + resident_bytes + 2 * _MIB
    if need <= 16 * _MIB:
        return None
    # TODO(synk): query pltpu.get_tpu_info() and allow >64 MiB on 128 MiB parts.
    return int(min(max(need, 32 * _MIB), 64 * _MIB))


# ----------------------------------------------------------------------------
# kernels
# ----------------------------------------------------------------------------
def _lora_lowrank_kernel(x_ref, p_ref, q_ref, o_ref, xp_ref):
    """y[i, j-tile] = (x[i] @ P) @ Q[:, j-tile].

    The first (K=F) matmul is done once per batch tile (j == 0) and its f32
    result persists in the xp scratch across the inner output-F axis.
    x arrives in its native dtype and is cast to bf16 in-kernel (VPU has slack
    under the MXU); xp is re-quantized to bf16 for the second MXU pass.
    """
    @pl.when(pl.program_id(1) == 0)
    def _():
        xp_ref[...] = jnp.dot(x_ref[...].astype(p_ref.dtype), p_ref[...],
                              preferred_element_type=jnp.float32)
    y = jnp.dot(xp_ref[...].astype(q_ref.dtype), q_ref[...],
                preferred_element_type=jnp.float32)
    o_ref[...] = y.astype(o_ref.dtype)


def _dense_kernel(x_ref, m_ref, o_ref):
    """y = x @ M  (M = U.T @ D.T @ U precomputed, bf16)."""
    o_ref[...] = jnp.dot(x_ref[...].astype(m_ref.dtype), m_ref[...],
                         preferred_element_type=jnp.float32).astype(o_ref.dtype)


def _dense_bias_kernel(x_ref, m_ref, b_ref, o_ref):
    """y = x @ M + b ; bias stays f32 until the final cast."""
    y = jnp.dot(x_ref[...].astype(m_ref.dtype), m_ref[...],
                preferred_element_type=jnp.float32)
    o_ref[...] = (y + b_ref[...].astype(jnp.float32)).astype(o_ref.dtype)


# ----------------------------------------------------------------------------
# wrappers (pallas_call plumbing)
# ----------------------------------------------------------------------------
def lora_lowrank_forward(x, P, Q, *, tb=256, tn=256):
    """x: (B, F); P: (F, r_pad) bf16; Q: (r_pad, N) bf16.  Returns (B, N).

    tb: batch tile.  256 is safe on all generations; sweep to 512 on v5e/v6e
    (128 MiB VMEM) at large F, keep <=256 on v7x (64 MiB VMEM).
    """
    B, F = x.shape
    Fp, r_pad = P.shape
    rq, N = Q.shape
    assert Fp == F and rq == r_pad
    out_dtype = x.dtype

    tb_eff = B if B <= tb else tb          # full-dim block is (8,128)-exempt
    tn_eff = N if N <= tn else tn
    nb = pl.cdiv(B, tb_eff)                # ragged tail handled by Pallas masking
    nf = pl.cdiv(N, tn_eff)

    streamed = (tb_eff * F * _itemsize(x.dtype)          # x tile
                + r_pad * tn_eff * _itemsize(P.dtype)    # Q slab
                + tb_eff * tn_eff * _itemsize(out_dtype))  # out tile
    resident = F * r_pad * _itemsize(P.dtype) + tb_eff * r_pad * 4  # P + xp
    limit = _vmem_limit_bytes(streamed, resident)

    return pl.pallas_call(
        _lora_lowrank_kernel,
        out_shape=jax.ShapeDtypeStruct((B, N), out_dtype),
        grid=(nb, nf),
        in_specs=[
            pl.BlockSpec((tb_eff, F), lambda i, j: (i, 0)),     # x: invariant over j
            pl.BlockSpec((F, r_pad), lambda i, j: (0, 0)),      # P: grid-invariant
            pl.BlockSpec((r_pad, tn_eff), lambda i, j: (0, j)),  # Q column slab
        ],
        out_specs=pl.BlockSpec((tb_eff, tn_eff), lambda i, j: (i, j)),
        scratch_shapes=[pltpu.VMEM((tb_eff, r_pad), jnp.float32)],
        compiler_params=pltpu.CompilerParams(
            # j must be sequential (the xp scratch is filled at j == 0);
            # the batch axis stays parallel for megacore sharding.
            dimension_semantics=("parallel", "arbitrary"),
            vmem_limit_bytes=limit),
    )(x, P, Q)


def dense_forward(x, M, b=None, *, tb=256, tn=256,
                  m_resident_budget=16 * _MIB):
    """x: (B, F); M: (F, N) bf16; b: (1, N) f32 or None.  Returns (B, N)."""
    B, F = x.shape
    K, N = M.shape
    assert K == F
    out_dtype = x.dtype

    tb_eff = B if B <= tb else tb
    nb = pl.cdiv(B, tb_eff)

    m_bytes = F * N * _itemsize(M.dtype)
    out_tile_bytes = tb_eff * N * _itemsize(out_dtype)

    if m_bytes <= m_resident_budget and out_tile_bytes <= m_resident_budget:
        # M (and bias) stay resident in VMEM across the whole batch sweep:
        # the weight matrix is DMA'd from HBM exactly once.
        streamed = tb_eff * F * _itemsize(x.dtype) + out_tile_bytes
        resident = m_bytes + (N * 4 if b is not None else 0)
        limit = _vmem_limit_bytes(streamed, resident)
        in_specs = [
            pl.BlockSpec((tb_eff, F), lambda i: (i, 0)),
            pl.BlockSpec((F, N), lambda i: (0, 0)),
        ]
        args = [x, M]
        kernel = _dense_kernel
        if b is not None:
            in_specs.append(pl.BlockSpec((1, N), lambda i: (0, 0)))
            args.append(b)
            kernel = _dense_bias_kernel
        return pl.pallas_call(
            kernel,
            out_shape=jax.ShapeDtypeStruct((B, N), out_dtype),
            grid=(nb,),
            in_specs=in_specs,
            out_specs=pl.BlockSpec((tb_eff, N), lambda i: (i, 0)),
            compiler_params=pltpu.CompilerParams(
                dimension_semantics=("parallel",),
                vmem_limit_bytes=limit),
        )(*args)

    # Large M: tile the output-N axis and make it the OUTER grid axis so each
    # (F, tn) weight slab is fetched from HBM once (it is invariant over the
    # inner batch axis) instead of once per batch tile.
    # TODO(synk): if xprof shows exposed weight-slab DMA at small tb, deepen
    # the M pipeline with pipeline_mode=pl.Buffered(3) (check v7x VMEM budget).
    # TODO(synk): K-axis tiling + f32 accumulator scratch once the
    # (tb,F)+(F,tn) slab pair no longer fits (relevant on v7x's 64 MiB first).
    tn_eff = N if N <= tn else tn
    nn = pl.cdiv(N, tn_eff)
    streamed = (tb_eff * F * _itemsize(x.dtype)
                + F * tn_eff * _itemsize(M.dtype)
                + tb_eff * tn_eff * _itemsize(out_dtype)
                + (tn_eff * 4 if b is not None else 0))
    limit = _vmem_limit_bytes(streamed, 0)
    in_specs = [
        pl.BlockSpec((tb_eff, F), lambda j, i: (i, 0)),
        pl.BlockSpec((F, tn_eff), lambda j, i: (0, j)),   # fetched once per j
    ]
    args = [x, M]
    kernel = _dense_kernel
    if b is not None:
        in_specs.append(pl.BlockSpec((1, tn_eff), lambda j, i: (0, j)))
        args.append(b)
        kernel = _dense_bias_kernel
    return pl.pallas_call(
        kernel,
        out_shape=jax.ShapeDtypeStruct((B, N), out_dtype),
        grid=(nn, nb),
        in_specs=in_specs,
        out_specs=pl.BlockSpec((tb_eff, tn_eff), lambda j, i: (i, j)),
        compiler_params=pltpu.CompilerParams(
            dimension_semantics=("parallel", "parallel"),
            vmem_limit_bytes=limit),
    )(*args)


# ----------------------------------------------------------------------------
# one-time weight precompute (plain-JAX glue; runs at weight-load time only)
# ----------------------------------------------------------------------------
def lora_precompute_factors(A, B, U, *, alpha, r, compute_dtype=jnp.bfloat16):
    """y = (x @ U.T @ (B@A).T @ U) * alpha/r  ==  (x @ P) @ Q.

    Note: alpha/r is folded into Q BEFORE the bf16 cast (quantized into the
    weights); rank is zero-padded to a multiple of 128 (mathematically exact)
    so the (tb, r_pad) intermediate is lane-dense and the second MXU pass uses
    full contraction depth.
    """
    P = _mm(U.T, A.T)                    # (F, r)
    Q = (alpha / r) * _mm(B.T, U)        # (r, F), scale folded in
    r_pad = max(_round_up(r, 128), 128)
    if r_pad != r:
        P = jnp.pad(P, ((0, 0), (0, r_pad - r)))
        Q = jnp.pad(Q, ((0, r_pad - r), (0, 0)))
    return P.astype(compute_dtype), Q.astype(compute_dtype)


def dense_precompute(D, U, *, compute_dtype=jnp.bfloat16):
    """y = x @ U.T @ D.T @ U (+ b)  ==  x @ M (+ b)."""
    M = _mm(_mm(U.T, D.T), U)            # (F, F)
    return M.astype(compute_dtype)


def make_lora_layer(params, *, r, alpha, bias=True, tb=256, tn=256,
                    compute_dtype=jnp.bfloat16):
    """Build the layer once (weight-load time) and return apply(x).

    All O(F^3)/O(F^2 r) precompute happens here, NOT per forward call.
    """
    U = params["U"]
    F_in = U.shape[0]
    assert U.shape == (F_in, F_in), "module math requires square features"

    if r > 0:
        P, Q = lora_precompute_factors(params["A"], params["B"], U,
                                       alpha=alpha, r=r,
                                       compute_dtype=compute_dtype)

        def apply(x):
            lead = x.shape[:-1]
            y = lora_lowrank_forward(x.reshape(-1, F_in), P, Q, tb=tb, tn=tn)
            return y.reshape(lead + (y.shape[-1],))
    else:
        M = dense_precompute(params["D"], U, compute_dtype=compute_dtype)
        b = (params["b"].reshape(1, -1).astype(jnp.float32)
             if bias else None)

        def apply(x):
            lead = x.shape[:-1]
            y = dense_forward(x.reshape(-1, F_in), M, b, tb=tb, tn=tn)
            return y.reshape(lead + (y.shape[-1],))

    return apply


# ----------------------------------------------------------------------------
# references
# ----------------------------------------------------------------------------
def lora_layer_reference(x, params, *, r, alpha, bias):
    """Pure-JAX f32 mirror of the PyTorch forward."""
    U = params["U"]
    xU = _mm(x, U.T)
    if r > 0:
        W = _mm(params["B"], params["A"])
        xUW = _mm(xU, W.T)
        return _mm(xUW, U) * alpha / r
    xUW = _mm(xU, params["D"].T)
    xUWUh = _mm(xUW, U)
    return xUWUh + params["b"] if bias else xUWUh


def _emulate_lowrank_kernel(x, P, Q):
    """Emulates the kernel numerics (bf16 operands, f32 accumulation, bf16
    re-quantization of the intermediate between the two matmuls)."""
    xf = x.astype(jnp.bfloat16).astype(jnp.float32)
    xp = _mm(xf, P.astype(jnp.float32)).astype(jnp.bfloat16).astype(jnp.float32)
    return _mm(xp, Q.astype(jnp.float32))


# ----------------------------------------------------------------------------
# test
# ----------------------------------------------------------------------------
if __name__ == "__main__":
    batch = 256
    in_features = out_features = 128
    r = 8
    alpha = 16

    key = jax.random.PRNGKey(0)
    kx, ka, kb, ku, kd, kbias = jax.random.split(key, 6)

    x = jax.random.normal(kx, (batch, in_features), jnp.float32)

    # Deterministic params.  reset_parameters() would give B = 0 / D = 0 and
    # U = eye (output identically zero); use nonzero values + an orthogonal U
    # (as produced by LoRALayer.randomize() + qr()) to exercise the kernels.
    bound = 1.0 / math.sqrt(in_features)          # kaiming_uniform_(a=sqrt(5))
    A = jax.random.uniform(ka, (r, in_features), jnp.float32, -bound, bound)
    B = jax.random.uniform(kb, (out_features, r), jnp.float32, -bound, bound)
    U_raw = jax.random.uniform(ku, (in_features, in_features), jnp.float32,
                               -bound, bound)
    U, _ = jnp.linalg.qr(U_raw)                   # glue: LoRALayer.qr()
    D = jax.random.uniform(kd, (in_features, out_features), jnp.float32,
                           -bound, bound)
    b = jax.random.uniform(kbias, (out_features,), jnp.float32, -bound, bound)

    # ---- r > 0 (LoRA, factored) path ----
    params_lora = {"A": A, "B": B, "U": U}
    lora_apply = make_lora_layer(params_lora, r=r, alpha=alpha, bias=True)
    out_lora = jax.block_until_ready(lora_apply(x))
    assert out_lora.shape == (batch, out_features)
    # Tight check vs. an exact emulation of the kernel numerics.
    P, Q = lora_precompute_factors(A, B, U, alpha=alpha, r=r)
    emu = _emulate_lowrank_kernel(x, P, Q)
    assert jnp.allclose(out_lora, emu, atol=2e-3, rtol=2e-3), (
        float(jnp.max(jnp.abs(out_lora - emu))))
    # Loose check vs. the full-precision module math (bf16 quantization noise).
    ref_lora = lora_layer_reference(x, params_lora, r=r, alpha=alpha, bias=True)
    assert jnp.allclose(out_lora, ref_lora, atol=6e-2, rtol=6e-2), (
        float(jnp.max(jnp.abs(out_lora - ref_lora))))

    # ---- ragged batch (B not a multiple of the batch tile, no pad/slice) ----
    x_rag = x[:200]
    out_rag = jax.block_until_ready(lora_lowrank_forward(x_rag, P, Q, tb=128))
    assert out_rag.shape == (200, out_features)
    assert jnp.allclose(out_rag, emu[:200], atol=2e-3, rtol=2e-3), (
        float(jnp.max(jnp.abs(out_rag - emu[:200]))))

    # ---- r == 0 (dense) path, with bias ----
    params_dense = {"D": D, "U": U, "b": b}
    dense_apply = make_lora_layer(params_dense, r=0, alpha=0, bias=True)
    out_dense = jax.block_until_ready(dense_apply(x))
    ref_dense = lora_layer_reference(x, params_dense, r=0, alpha=0, bias=True)
    assert out_dense.shape == (batch, out_features)
    assert jnp.allclose(out_dense, ref_dense, atol=6e-2, rtol=6e-2), (
        float(jnp.max(jnp.abs(out_dense - ref_dense))))

    # ---- r == 0 (dense) path, no bias ----
    params_nb = {"D": D, "U": U}
    nb_apply = make_lora_layer(params_nb, r=0, alpha=0, bias=False)
    out_nb = jax.block_until_ready(nb_apply(x))
    ref_nb = lora_layer_reference(x, params_nb, r=0, alpha=0, bias=False)
    assert jnp.allclose(out_nb, ref_nb, atol=6e-2, rtol=6e-2), (
        float(jnp.max(jnp.abs(out_nb - ref_nb))))

    print("KERNEL_OK")
</pallas_src>

<mosaic_0001>
module attributes {stable_mosaic.version = 11 : i64} {
  func.func @_lora_lowrank_kernel(%arg0: i32, %arg1: i32, %arg2: memref<256x128xf32, #tpu.memory_space<vmem>>, %arg3: memref<128x128xbf16, #tpu.memory_space<vmem>>, %arg4: memref<128x128xbf16, #tpu.memory_space<vmem>>, %arg5: memref<256x128xf32, #tpu.memory_space<vmem>>, %arg6: memref<256x128xf32, #tpu.memory_space<vmem>>) attributes {dimension_semantics = [#tpu.dimension_semantics<parallel>, #tpu.dimension_semantics<arbitrary>], iteration_bounds = array<i64: 1, 1>, scalar_prefetch = 0 : i64, scratch_operands = 1 : i64, tpu.core_type = #tpu.core_type<tc>, window_params = [{transform_indices = @transform_0, window_bounds = array<i64: 256, 128>}, {pipeline_mode = #tpu.pipeline_mode<synchronous>, transform_indices = @transform_1, window_bounds = array<i64: 128, 128>}, {transform_indices = @transform_2, window_bounds = array<i64: 128, 128>}, {transform_indices = @transform_3, window_bounds = array<i64: 256, 128>}]} {
    %c0_i32 = arith.constant 0 : i32
    %0 = arith.cmpi eq, %arg1, %c0_i32 : i32
    %1 = arith.extui %0 : i1 to i32
    %c0_i32_0 = arith.constant 0 : i32
    %2 = arith.cmpi ne, %1, %c0_i32_0 : i32
    scf.if %2 {
      %c0_6 = arith.constant 0 : index
      %c0_7 = arith.constant 0 : index
      %8 = vector.load %arg2[%c0_6, %c0_7] : memref<256x128xf32, #tpu.memory_space<vmem>>, vector<256x128xf32>
      %9 = arith.truncf %8 : vector<256x128xf32> to vector<256x128xbf16>
      %c0_8 = arith.constant 0 : index
      %c0_9 = arith.constant 0 : index
      %10 = vector.load %arg3[%c0_8, %c0_9] : memref<128x128xbf16, #tpu.memory_space<vmem>>, vector<128x128xbf16>
      %cst_10 = arith.constant dense<0.000000e+00> : vector<256x128xf32>
      %11 = tpu.matmul %9, %10, %cst_10 {dimension_numbers = #tpu.dot_dimension_numbers<[1], [0], [0], [1], [0, 0, 1, 1], [], []>} : vector<256x128xbf16>, vector<128x128xbf16>, vector<256x128xf32> -> vector<256x128xf32>
      %c0_11 = arith.constant 0 : index
      %c0_12 = arith.constant 0 : index
      %12 = vector.load %arg6[%c0_11, %c0_12] : memref<256x128xf32, #tpu.memory_space<vmem>>, vector<256x128xf32>
      tpu.vector_store %arg6[%c0_11, %c0_12], %11 {strides = array<i32>} : memref<256x128xf32, #tpu.memory_space<vmem>>, vector<256x128xf32>,
    } else {
    }
    %c0 = arith.constant 0 : index
    %c0_1 = arith.constant 0 : index
    %3 = vector.load %arg6[%c0, %c0_1] : memref<256x128xf32, #tpu.memory_space<vmem>>, vector<256x128xf32>
    %4 = arith.truncf %3 : vector<256x128xf32> to vector<256x128xbf16>
    %c0_2 = arith.constant 0 : index
    %c0_3 = arith.constant 0 : index
    %5 = vector.load %arg4[%c0_2, %c0_3] : memref<128x128xbf16, #tpu.memory_space<vmem>>, vector<128x128xbf16>
    %cst = arith.constant dense<0.000000e+00> : vector<256x128xf32>
    %6 = tpu.matmul %4, %5, %cst {dimension_numbers = #tpu.dot_dimension_numbers<[1], [0], [0], [1], [0, 0, 1, 1], [], []>} : vector<256x128xbf16>, vector<128x128xbf16>, vector<256x128xf32> -> vector<256x128xf32>
    %c0_4 = arith.constant 0 : index
    %c0_5 = arith.constant 0 : index
    %7 = vector.load %arg5[%c0_4, %c0_5] : memref<256x128xf32, #tpu.memory_space<vmem>>, vector<256x128xf32>
    tpu.vector_store %arg5[%c0_4, %c0_5], %6 {strides = array<i32>} : memref<256x128xf32, #tpu.memory_space<vmem>>, vector<256x128xf32>,
    return
  }
  func.func @transform_0(%arg0: i32, %arg1: i32) -> (i32, i32) {
    %c0_i32 = arith.constant 0 : i32
    %c0_i32_0 = arith.constant 0 : i32
    return %arg0, %c0_i32 : i32, i32
  }
  func.func @transform_1(%arg0: i32, %arg1: i32) -> (i32, i32) {
    %c0_i32 = arith.constant 0 : i32
    %c0_i32_0 = arith.constant 0 : i32
    %c0_i32_1 = arith.constant 0 : i32
    return %c0_i32, %c0_i32_0 : i32, i32
  }
  func.func @transform_2(%arg0: i32, %arg1: i32) -> (i32, i32) {
    %c0_i32 = arith.constant 0 : i32
    %c0_i32_0 = arith.constant 0 : i32
    return %c0_i32, %arg1 : i32, i32
  }
  func.func @transform_3(%arg0: i32, %arg1: i32) -> (i32, i32) {
    %c0_i32 = arith.constant 0 : i32
    return %arg0, %arg1 : i32, i32
  }
}

</mosaic_0001>

<bundles_post_ra>
// kernel: tpu_custom_call.1
= control target key start
LH: loop header
LB: loop body
LE: loop exit
PB: predicated region body
PF: predicated region fallthrough
CT: control target
= control target key end

     0   :  { %8 = vsyncpa [#allocation4], 0  ;;  %s1055_s0 = inlined_call_operand.hbm [shape: f32[256,128], index: 0, kind: input, shape index: {}]   ;;  %s1056_s1 = inlined_call_operand.hbm [shape: bf16[128,128], index: 1, kind: input, shape index: {}]   ;;  %s1057_s2 = inlined_call_operand.hbm [shape: bf16[128,128], index: 2, kind: input, shape index: {}]   ;;  %s1058_s3 = inlined_call_operand.hbm [shape: f32[256,128], index: 3, kind: output, shape index: {}]  }
   0x1   :  { %9 = vsyncpa [#allocation7], 0 }
   0x2   :  { %10 = vsyncpa [#allocation5], 0  ;;  %s967_s12 = smov [#allocation6]   ;;  %s873_s16 = scalar_lea.hbm %s1056_s1, 1024 }
   0x3   :  { %s28_s13 = sshll.u32 %s967_s12, 4  ;;  %p874_p0 = scmp.ne.s32.totalorder %s1056_s1, %s873_s16  ;;  %s29_s13 = int_to_ptr.vmem [resolvable:$true] %s28_s13 }
   0x4   :  { %p877_p1 = scmp.lt.u32.totalorder %s873_s16, %s1056_s1 }
   0x6   :  { %p879_p2 = pnand %p877_p1, %p874_p0 }
   0x8   :  { %882 = shalt.err (!%p879_p2)
}
   0x9   :  { %s883_s21 = scalar_lea.vmem %s29_s13, 1024  ;;  %p888_p4 = scmp.lt.s32.totalorder %s29_s13, %s29_s13 }
   0xa   :  { %p884_p3 = scmp.ne.s32.totalorder %s29_s13, %s883_s21  ;;  %p889_p5 = scmp.lt.s32.totalorder %s883_s21, %s883_s21 }
   0xc   :  { %p890_p6 = por %p889_p5, %p888_p4 }
   0xe   :  { %p891_p7 = pnand %p890_p6, %p884_p3 }
  0x10   :  { %894 = shalt.err (!%p891_p7)
}
  0x11   :  { %s968_s22 = smov 64   ;;  %s969_s23 = smov 4  }
  0x12   :  { %34 = dma.hbm_to_vmem [thread:$0]  %s1056_s1, 1024, %s29_s13, [#allocation7], %s968_s22, %s968_s22, %s969_s23  }
  0x13   :  { %s970_s26 = smov [#allocation3]   ;;  %s895_s30 = scalar_lea.hbm %s1055_s0, 4096 }
  0x14   :  { %s16_s27 = sshll.u32 %s970_s26, 4  ;;  %p896_p8 = scmp.ne.s32.totalorder %s1055_s0, %s895_s30  ;;  %s17_s27 = int_to_ptr.vmem [resolvable:$true] %s16_s27 }
  0x15   :  { %p899_p9 = scmp.lt.u32.totalorder %s895_s30, %s1055_s0 }
  0x17   :  { %p901_p10 = pnand %p899_p9, %p896_p8 }
  0x19   :  { %904 = shalt.err (!%p901_p10)
}
  0x1a   :  { %s905_s8 = scalar_lea.vmem %s17_s27, 4096  ;;  %p910_p12 = scmp.lt.s32.totalorder %s17_s27, %s17_s27 }
  0x1b   :  { %p906_p11 = scmp.ne.s32.totalorder %s17_s27, %s905_s8  ;;  %p911_p13 = scmp.lt.s32.totalorder %s905_s8, %s905_s8 }
  0x1d   :  { %p912_p0 = por %p911_p13, %p910_p12 }
  0x1f   :  { %p913_p1 = pnand %p912_p0, %p906_p11 }
  0x21   :  { %916 = shalt.err (!%p913_p1)
}
  0x22   :  { %s971_s1 = smov 128   ;;  %s972_s9 = smov 8  }
  0x23   :  { %22 = dma.hbm_to_vmem [thread:$0]  %s1055_s0, 4096, %s17_s27, [#allocation4], %s971_s1, %s971_s1, %s972_s9  }
  0x24   :  { %s973_s12 = smov [#allocation8]   ;;  %s917_s16 = scalar_lea.hbm %s1057_s2, 1024 }
  0x25   :  { %s40_s13 = sshll.u32 %s973_s12, 4  ;;  %p918_p2 = scmp.ne.s32.totalorder %s1057_s2, %s917_s16  ;;  %s41_s13 = int_to_ptr.vmem [resolvable:$true] %s40_s13 }
  0x26   :  { %p921_p3 = scmp.lt.u32.totalorder %s917_s16, %s1057_s2 }
  0x28   :  { %p923_p4 = pnand %p921_p3, %p918_p2 }
  0x2a   :  { %926 = shalt.err (!%p923_p4)
}
  0x2b   :  { %s927_s21 = scalar_lea.vmem %s41_s13, 1024  ;;  %p932_p6 = scmp.lt.s32.totalorder %s41_s13, %s41_s13 }
  0x2c   :  { %p928_p5 = scmp.ne.s32.totalorder %s41_s13, %s927_s21  ;;  %p933_p7 = scmp.lt.s32.totalorder %s927_s21, %s927_s21 }
  0x2e   :  { %p934_p8 = por %p933_p7, %p932_p6 }
  0x30   :  { %p935_p9 = pnand %p934_p8, %p928_p5 }
  0x32   :  { %938 = shalt.err (!%p935_p9)
}
  0x33   :  { %46 = dma.hbm_to_vmem [thread:$0]  %s1057_s2, 1024, %s41_s13, [#allocation7], %s968_s22, %s968_s22, %s969_s23  }
  0x34   :  { %961 = dma.done.wait [#allocation4], 4096  }
  0x35   :  { %962 = vsyncadd [#allocation4], 4294963200 }
  0x36   :  { %963 = dma.done.wait [#allocation7], 2048  }
  0x37   :  { %964 = vsyncadd [#allocation7], 4294965248  ;;  %v857_v0 = vld [vmem:[#allocation6] sm:$0xff]   ;;  %v858_v1 = vld [vmem:[#allocation6 + $0x8] sm:$0xff]   ;;  %s974_s2 = smov [#allocation9]  }
  0x38   :  { %753 = vmatprep.subr.bf16.mxu0 %v857_v0  ;;  %v859_v2 = vld [vmem:[#allocation6 + $0x10] sm:$0xff]   ;;  %v860_v3 = vld [vmem:[#allocation6 + $0x18] sm:$0xff]   ;;  %v61_v4 = vld [vmem:[#allocation3] sm:$0xff]  ;;  %s676_s22 = sshll.u32 %s974_s2, 4  ;;  %s677_s22 = int_to_ptr.vmem [resolvable:$true] %s676_s22 }
  0x39   :  { %754 = vmatpush3.bf16.msra.mxu0 %v857_v0  ;;  %v62_v5 = vld [vmem:[#allocation3 + $0x8] sm:$0xff]  ;;  %v861_v7 = vld [vmem:[#allocation6 + $0x20] sm:$0xff]   ;;  %v863_v9 = vld [vmem:[#allocation6 + $0x30] sm:$0xff]   ;;  %s939_s23 = scalar_lea.vmem %s677_s22, 4096  ;;  %p944_p11 = scmp.lt.s32.totalorder %s677_s22, %s677_s22 }
  0x3a   :  { %755 = vmatprep.subr.bf16.mxu0 %v858_v1  ;;  %v93_v6 = vpack.c.bf16 %v62_v5, %v61_v4  ;;  %v862_v8 = vld [vmem:[#allocation6 + $0x28] sm:$0xff]   ;;  %v865_v10 = vld [vmem:[#allocation8] sm:$0xff]   ;;  %v867_v12 = vld [vmem:[#allocation8 + $0x10] sm:$0xff]   ;;  %p940_p10 = scmp.ne.s32.totalorder %s677_s22, %s939_s23  ;;  %p945_p12 = scmp.lt.s32.totalorder %s939_s23, %s939_s23 }
  0x3b   :  { %v866_v11 = vld [vmem:[#allocation8 + $0x8] sm:$0xff]   ;;  %801 = vmatprep.subr.bf16.mxu1 %v865_v10  ;;  %v864_v13 = vld [vmem:[#allocation6 + $0x38] sm:$0xff]   ;;  %v63_v14 = vld [vmem:[#allocation3 + $0x10] sm:$0xff] }
  0x3c   :  { %769 = vmatprep.mubr.bf16.mxu0 %v93_v6  ;;  %802 = vmatpush3.bf16.msra.mxu1 %v865_v10  ;;  %v64_v15 = vld [vmem:[#allocation3 + $0x18] sm:$0xff]  ;;  %v65_v17 = vld [vmem:[#allocation3 + $0x20] sm:$0xff]  ;;  %v66_v18 = vld [vmem:[#allocation3 + $0x28] sm:$0xff]  ;;  %p946_p13 = por %p945_p12, %p944_p11 }
  0x3d   :  { %756 = vmatpush3.bf16.msra.mxu0 %v858_v1  ;;  %803 = vmatprep.subr.bf16.mxu1 %v866_v11  ;;  %v868_v16 = vld [vmem:[#allocation8 + $0x18] sm:$0xff]   ;;  %v94_v19 = vpack.c.bf16 %v64_v15, %v63_v14  ;;  %v95_v20 = vpack.c.bf16 %v66_v18, %v65_v17  ;;  %v869_v21 = vld [vmem:[#allocation8 + $0x20] sm:$0xff]   ;;  %v67_v22 = vld [vmem:[#allocation3 + $0x30] sm:$0xff] }
  0x3e   :  { %757 = vmatprep.subr.bf16.mxu0 %v859_v2  ;;  %v68_v23 = vld [vmem:[#allocation3 + $0x38] sm:$0xff]  ;;  %v870_v24 = vld [vmem:[#allocation8 + $0x28] sm:$0xff]   ;;  %v69_v25 = vld [vmem:[#allocation3 + $0x40] sm:$0xff]  ;;  %p947_p0 = pnand %p946_p13, %p940_p10 }
  0x3f   :  { %v70_v26 = vld [vmem:[#allocation3 + $0x48] sm:$0xff]  ;;  %v96_v27 = vpack.c.bf16 %v68_v23, %v67_v22  ;;  %v871_v29 = vld [vmem:[#allocation8 + $0x30] sm:$0xff]   ;;  %v72_v31 = vld [vmem:[#allocation3 + $0x58] sm:$0xff] }
  0x40   :  { %804 = vmatpush3.bf16.msra.mxu1 %v866_v11  ;;  %v97_v28 = vpack.c.bf16 %v70_v26, %v69_v25  ;;  %v71_v30 = vld [vmem:[#allocation3 + $0x50] sm:$0xff]  ;;  %v73_v32 = vld [vmem:[#allocation3 + $0x60] sm:$0xff]  ;;  %v74_v33 = vld [vmem:[#allocation3 + $0x68] sm:$0xff] }
  0x41   :  { %758 = vmatpush3.bf16.msra.mxu0 %v859_v2  ;;  %805 = vmatprep.subr.bf16.mxu1 %v867_v12  ;;  %v98_v34 = vpack.c.bf16 %v72_v31, %v71_v30  ;;  %v99_v35 = vpack.c.bf16 %v74_v33, %v73_v32  ;;  %v75_v36 = vld [vmem:[#allocation3 + $0x70] sm:$0xff]  ;;  %v76_v37 = vld [vmem:[#allocation3 + $0x78] sm:$0xff]  ;;  %v77_v38 = vld [vmem:[#allocation3 + $0x80] sm:$0xff] }
  0x42   :  { %759 = vmatprep.subr.bf16.mxu0 %v860_v3  ;;  %v78_v39 = vld [vmem:[#allocation3 + $0x88] sm:$0xff]  ;;  %v100_v40 = vpack.c.bf16 %v76_v37, %v75_v36  ;;  %v79_v42 = vld [vmem:[#allocation3 + $0x90] sm:$0xff]  ;;  %v80_v43 = vld [vmem:[#allocation3 + $0x98] sm:$0xff] }
  0x43   :  { %v101_v41 = vpack.c.bf16 %v78_v39, %v77_v38  ;;  %v81_v44 = vld [vmem:[#allocation3 + $0xa0] sm:$0xff]  ;;  %v82_v45 = vld [vmem:[#allocation3 + $0xa8] sm:$0xff]  ;;  %v102_v46 = vpack.c.bf16 %v80_v43, %v79_v42  ;;  %v83_v48 = vld [vmem:[#allocation3 + $0xb0] sm:$0xff] }
  0x44   :  { %806 = vmatpush3.bf16.msra.mxu1 %v867_v12  ;;  %v103_v47 = vpack.c.bf16 %v82_v45, %v81_v44  ;;  %v84_v49 = vld [vmem:[#allocation3 + $0xb8] sm:$0xff]  ;;  %v85_v50 = vld [vmem:[#allocation3 + $0xc0] sm:$0xff]  ;;  %v86_v51 = vld [vmem:[#allocation3 + $0xc8] sm:$0xff] }
  0x45   :  { %760 = vmatpush3.bf16.msra.mxu0 %v860_v3  ;;  %807 = vmatprep.subr.bf16.mxu1 %v868_v16  ;;  %v104_v52 = vpack.c.bf16 %v84_v49, %v83_v48  ;;  %v105_v53 = vpack.c.bf16 %v86_v51, %v85_v50  ;;  %v87_v54 = vld [vmem:[#allocation3 + $0xd0] sm:$0xff]  ;;  %v88_v55 = vld [vmem:[#allocation3 + $0xd8] sm:$0xff]  ;;  %v89_v56 = vld [vmem:[#allocation3 + $0xe0] sm:$0xff] }
  0x46   :  { %761 = vmatprep.subr.bf16.mxu0 %v861_v7  ;;  %v90_v57 = vld [vmem:[#allocation3 + $0xe8] sm:$0xff]  ;;  %v106_v58 = vpack.c.bf16 %v88_v55, %v87_v54  ;;  %v91_v60 = vld [vmem:[#allocation3 + $0xf0] sm:$0xff]  ;;  %v92_v61 = vld [vmem:[#allocation3 + $0xf8] sm:$0xff] }
  0x47   :  { %v107_v59 = vpack.c.bf16 %v90_v57, %v89_v56  ;;  %v108_v62 = vpack.c.bf16 %v92_v61, %v91_v60  ;;  %v872_v63 = vld [vmem:[#allocation8 + $0x38] sm:$0xff]  }
  0x48   :  { %808 = vmatpush3.bf16.msra.mxu1 %v868_v16 }
  0x49   :  { %762 = vmatpush3.bf16.msra.mxu0 %v861_v7  ;;  %809 = vmatprep.subr.bf16.mxu1 %v869_v21 }
  0x4a   :  { %763 = vmatprep.subr.bf16.mxu0 %v862_v8 }
  0x4c   :  { %810 = vmatpush3.bf16.msra.mxu1 %v869_v21 }
  0x4d   :  { %764 = vmatpush3.bf16.msra.mxu0 %v862_v8  ;;  %811 = vmatprep.subr.bf16.mxu1 %v870_v24 }
  0x4e   :  { %765 = vmatprep.subr.bf16.mxu0 %v863_v9 }
  0x50   :  { %812 = vmatpush3.bf16.msra.mxu1 %v870_v24 }
  0x51   :  { %766 = vmatpush3.bf16.msra.mxu0 %v863_v9  ;;  %813 = vmatprep.subr.bf16.mxu1 %v871_v29 }
  0x52   :  { %767 = vmatprep.subr.bf16.mxu0 %v864_v13 }
  0x54   :  { %814 = vmatpush3.bf16.msra.mxu1 %v871_v29 }
  0x55   :  { %768 = vmatpush3.bf16.msra.mxu0 %v864_v13  ;;  %815 = vmatprep.subr.bf16.mxu1 %v872_v63 }
  0x58   :  { %770 = vmatmul.mubr.bf16.vlgmr.msra.gmra.mrb[0].mxu0 %v94_v19  ;;  %816 = vmatpush3.bf16.msra.mxu1 %v872_v63 }
  0x59   :  { %773 = vmatprep.mubr.bf16.mxu0 %v95_v20 }
  0x60   :  { %774 = vmatmul.mubr.bf16.gmra.mrb[4].mxu0 %v96_v27 }
  0x61   :  { %777 = vmatprep.mubr.bf16.mxu0 %v97_v28 }
  0x68   :  { %778 = vmatmul.mubr.bf16.gmra.mrb[8].mxu0 %v98_v34 }
  0x69   :  { %781 = vmatprep.mubr.bf16.mxu0 %v99_v35 }
  0x70   :  { %782 = vmatmul.mubr.bf16.gmra.mrb[12].mxu0 %v100_v40 }
  0x71   :  { %785 = vmatprep.mubr.bf16.mxu0 %v101_v41 }
  0x78   :  { %786 = vmatmul.mubr.bf16.gmra.mrb[16].mxu0 %v102_v46 }
  0x79   :  { %789 = vmatprep.mubr.bf16.mxu0 %v103_v47 }
  0x80   :  { %790 = vmatmul.mubr.bf16.gmra.mrb[20].mxu0 %v104_v52 }
  0x81   :  { %793 = vmatprep.mubr.bf16.mxu0 %v105_v53 }
  0x88   :  { %794 = vmatmul.mubr.bf16.gmra.mrb[24].mxu0 %v106_v58 }
  0x89   :  { %797 = vmatprep.mubr.bf16.mxu0 %v107_v59 }
  0x90   :  { %798 = vmatmul.mubr.bf16.gmra.mrb[28].mxu0 %v108_v62 }
 0x12b   :  { %v771_v0 = vpop.f32.mrb[0].mxu0 }
 0x12c   :  { %v207_v1 = vpop.f32.mrb[1].mxu0 }
 0x12d   :  { %v772_v2 = vpop.f32.mrb[2].mxu0 }
 0x12e   :  { %v399_v3 = vpack.c.bf16 %v772_v2, %v771_v0  ;;  %v210_v4 = vpop.f32.mrb[3].mxu0 }
 0x12f   :  { %v398_v5 = vpack.c.bf16 %v210_v4, %v207_v1 }
 0x131   :  { %817 = vmatprep.mubr.bf16.mxu1 %v398_v5 }
 0x132   :  { %818 = vmatmul.mubr.bf16.vlgmr.msra.gmra.mrb[0].mxu1 %v399_v3 }
 0x133   :  { %v775_v6 = vpop.f32.mrb[4].mxu0 }
 0x134   :  { %v223_v7 = vpop.f32.mrb[5].mxu0 }
 0x135   :  { %v776_v8 = vpop.f32.mrb[6].mxu0 }
 0x136   :  { %v401_v9 = vpack.c.bf16 %v776_v8, %v775_v6  ;;  %v226_v10 = vpop.f32.mrb[7].mxu0 }
 0x137   :  { %v400_v11 = vpack.c.bf16 %v226_v10, %v223_v7 }
 0x139   :  { %821 = vmatprep.mubr.bf16.mxu1 %v400_v11 }
 0x13a   :  { %822 = vmatmul.mubr.bf16.gmra.mrb[4].mxu1 %v401_v9 }
 0x13b   :  { %v779_v12 = vpop.f32.mrb[8].mxu0 }
 0x13c   :  { %v239_v13 = vpop.f32.mrb[9].mxu0 }
 0x13d   :  { %v780_v14 = vpop.f32.mrb[10].mxu0 }
 0x13e   :  { %v403_v15 = vpack.c.bf16 %v780_v14, %v779_v12  ;;  %v242_v16 = vpop.f32.mrb[11].mxu0 }
 0x13f   :  { %v402_v17 = vpack.c.bf16 %v242_v16, %v239_v13 }
 0x141   :  { %825 = vmatprep.mubr.bf16.mxu1 %v402_v17 }
 0x142   :  { %826 = vmatmul.mubr.bf16.gmra.mrb[8].mxu1 %v403_v15 }
 0x143   :  { %v783_v18 = vpop.f32.mrb[12].mxu0 }
 0x144   :  { %v255_v19 = vpop.f32.mrb[13].mxu0 }
 0x145   :  { %v784_v20 = vpop.f32.mrb[14].mxu0 }
 0x146   :  { %v405_v21 = vpack.c.bf16 %v784_v20, %v783_v18  ;;  %v258_v22 = vpop.f32.mrb[15].mxu0 }
 0x147   :  { %v404_v23 = vpack.c.bf16 %v258_v22, %v255_v19 }
 0x149   :  { %829 = vmatprep.mubr.bf16.mxu1 %v404_v23 }
 0x14a   :  { %830 = vmatmul.mubr.bf16.gmra.mrb[12].mxu1 %v405_v21 }
 0x14b   :  { %v787_v24 = vpop.f32.mrb[16].mxu0 }
 0x14c   :  { %v271_v25 = vpop.f32.mrb[17].mxu0 }
 0x14d   :  { %v788_v26 = vpop.f32.mrb[18].mxu0 }
 0x14e   :  { %v407_v27 = vpack.c.bf16 %v788_v26, %v787_v24  ;;  %v274_v28 = vpop.f32.mrb[19].mxu0 }
 0x14f   :  { %v406_v29 = vpack.c.bf16 %v274_v28, %v271_v25 }
 0x151   :  { %833 = vmatprep.mubr.bf16.mxu1 %v406_v29 }
 0x152   :  { %834 = vmatmul.mubr.bf16.gmra.mrb[16].mxu1 %v407_v27 }
 0x153   :  { %v791_v30 = vpop.f32.mrb[20].mxu0 }
 0x154   :  { %v287_v31 = vpop.f32.mrb[21].mxu0 }
 0x155   :  { %v792_v32 = vpop.f32.mrb[22].mxu0 }
 0x156   :  { %v409_v33 = vpack.c.bf16 %v792_v32, %v791_v30  ;;  %v290_v34 = vpop.f32.mrb[23].mxu0 }
 0x157   :  { %v408_v35 = vpack.c.bf16 %v290_v34, %v287_v31 }
 0x159   :  { %837 = vmatprep.mubr.bf16.mxu1 %v408_v35 }
 0x15a   :  { %838 = vmatmul.mubr.bf16.gmra.mrb[20].mxu1 %v409_v33 }
 0x15b   :  { %v795_v36 = vpop.f32.mrb[24].mxu0 }
 0x15c   :  { %v303_v37 = vpop.f32.mrb[25].mxu0 }
 0x15d   :  { %v796_v38 = vpop.f32.mrb[26].mxu0 }
 0x15e   :  { %v411_v39 = vpack.c.bf16 %v796_v38, %v795_v36  ;;  %v306_v40 = vpop.f32.mrb[27].mxu0 }
 0x15f   :  { %v410_v41 = vpack.c.bf16 %v306_v40, %v303_v37 }
 0x161   :  { %841 = vmatprep.mubr.bf16.mxu1 %v410_v41 }
 0x162   :  { %842 = vmatmul.mubr.bf16.gmra.mrb[24].mxu1 %v411_v39 }
 0x163   :  { %v799_v42 = vpop.f32.mrb[28].mxu0 }
 0x164   :  { %v319_v43 = vpop.f32.mrb[29].mxu0 }
 0x165   :  { %v800_v44 = vpop.f32.mrb[30].mxu0 }
 0x166   :  { %v413_v45 = vpack.c.bf16 %v800_v44, %v799_v42  ;;  %v322_v46 = vpop.f32.mrb[31].mxu0 }
 0x167   :  { %v412_v47 = vpack.c.bf16 %v322_v46, %v319_v43 }
 0x169   :  { %845 = vmatprep.mubr.bf16.mxu1 %v412_v47 }
 0x16a   :  { %846 = vmatmul.mubr.bf16.gmra.mrb[28].mxu1 %v413_v45 }
 0x205   :  { %v819_v48 = vpop.f32.mrb[0].mxu1 }
 0x206   :  { %641 = vst [vmem:[#allocation9 + $0x10] sm:$0xff] %v819_v48  ;;  %v512_v49 = vpop.f32.mrb[1].mxu1 }
 0x207   :  { %639 = vst [vmem:[#allocation9] sm:$0xff] %v512_v49  ;;  %v820_v50 = vpop.f32.mrb[2].mxu1 }
 0x208   :  { %642 = vst [vmem:[#allocation9 + $0x18] sm:$0xff] %v820_v50  ;;  %v515_v51 = vpop.f32.mrb[3].mxu1 }
 0x209   :  { %640 = vst [vmem:[#allocation9 + $0x8] sm:$0xff] %v515_v51 }
 0x20d   :  { %v823_v52 = vpop.f32.mrb[4].mxu1 }
 0x20e   :  { %645 = vst [vmem:[#allocation9 + $0x30] sm:$0xff] %v823_v52  ;;  %v528_v53 = vpop.f32.mrb[5].mxu1 }
 0x20f   :  { %643 = vst [vmem:[#allocation9 + $0x20] sm:$0xff] %v528_v53  ;;  %v824_v54 = vpop.f32.mrb[6].mxu1 }
 0x210   :  { %646 = vst [vmem:[#allocation9 + $0x38] sm:$0xff] %v824_v54  ;;  %v531_v55 = vpop.f32.mrb[7].mxu1 }
 0x211   :  { %644 = vst [vmem:[#allocation9 + $0x28] sm:$0xff] %v531_v55 }
 0x215   :  { %v827_v56 = vpop.f32.mrb[8].mxu1 }
 0x216   :  { %649 = vst [vmem:[#allocation9 + $0x50] sm:$0xff] %v827_v56  ;;  %v544_v57 = vpop.f32.mrb[9].mxu1 }
 0x217   :  { %647 = vst [vmem:[#allocation9 + $0x40] sm:$0xff] %v544_v57  ;;  %v828_v58 = vpop.f32.mrb[10].mxu1 }
 0x218   :  { %650 = vst [vmem:[#allocation9 + $0x58] sm:$0xff] %v828_v58  ;;  %v547_v59 = vpop.f32.mrb[11].mxu1 }
 0x219   :  { %648 = vst [vmem:[#allocation9 + $0x48] sm:$0xff] %v547_v59 }
 0x21d   :  { %v831_v60 = vpop.f32.mrb[12].mxu1 }
 0x21e   :  { %653 = vst [vmem:[#allocation9 + $0x70] sm:$0xff] %v831_v60  ;;  %v560_v61 = vpop.f32.mrb[13].mxu1 }
 0x21f   :  { %651 = vst [vmem:[#allocation9 + $0x60] sm:$0xff] %v560_v61  ;;  %v832_v62 = vpop.f32.mrb[14].mxu1 }
 0x220   :  { %654 = vst [vmem:[#allocation9 + $0x78] sm:$0xff] %v832_v62  ;;  %v563_v63 = vpop.f32.mrb[15].mxu1 }
 0x221   :  { %652 = vst [vmem:[#allocation9 + $0x68] sm:$0xff] %v563_v63 }
 0x225   :  { %v835_v0 = vpop.f32.mrb[16].mxu1 }
 0x226   :  { %657 = vst [vmem:[#allocation9 + $0x90] sm:$0xff] %v835_v0  ;;  %v576_v1 = vpop.f32.mrb[17].mxu1 }
 0x227   :  { %655 = vst [vmem:[#allocation9 + $0x80] sm:$0xff] %v576_v1  ;;  %v836_v2 = vpop.f32.mrb[18].mxu1 }
 0x228   :  { %658 = vst [vmem:[#allocation9 + $0x98] sm:$0xff] %v836_v2  ;;  %v579_v3 = vpop.f32.mrb[19].mxu1 }
 0x229   :  { %656 = vst [vmem:[#allocation9 + $0x88] sm:$0xff] %v579_v3 }
 0x22d   :  { %v839_v4 = vpop.f32.mrb[20].mxu1 }
 0x22e   :  { %661 = vst [vmem:[#allocation9 + $0xb0] sm:$0xff] %v839_v4  ;;  %v592_v5 = vpop.f32.mrb[21].mxu1 }
 0x22f   :  { %659 = vst [vmem:[#allocation9 + $0xa0] sm:$0xff] %v592_v5  ;;  %v840_v6 = vpop.f32.mrb[22].mxu1 }
 0x230   :  { %662 = vst [vmem:[#allocation9 + $0xb8] sm:$0xff] %v840_v6  ;;  %v595_v7 = vpop.f32.mrb[23].mxu1 }
 0x231   :  { %660 = vst [vmem:[#allocation9 + $0xa8] sm:$0xff] %v595_v7 }
 0x235   :  { %v843_v8 = vpop.f32.mrb[24].mxu1 }
 0x236   :  { %665 = vst [vmem:[#allocation9 + $0xd0] sm:$0xff] %v843_v8  ;;  %v608_v9 = vpop.f32.mrb[25].mxu1 }
 0x237   :  { %663 = vst [vmem:[#allocation9 + $0xc0] sm:$0xff] %v608_v9  ;;  %v844_v10 = vpop.f32.mrb[26].mxu1 }
 0x238   :  { %666 = vst [vmem:[#allocation9 + $0xd8] sm:$0xff] %v844_v10  ;;  %v611_v11 = vpop.f32.mrb[27].mxu1 }
 0x239   :  { %664 = vst [vmem:[#allocation9 + $0xc8] sm:$0xff] %v611_v11 }
 0x23d   :  { %v847_v12 = vpop.f32.mrb[28].mxu1 }
 0x23e   :  { %669 = vst [vmem:[#allocation9 + $0xf0] sm:$0xff] %v847_v12  ;;  %v624_v13 = vpop.f32.mrb[29].mxu1 }
 0x23f   :  { %667 = vst [vmem:[#allocation9 + $0xe0] sm:$0xff] %v624_v13  ;;  %v848_v14 = vpop.f32.mrb[30].mxu1 }
 0x240   :  { %670 = vst [vmem:[#allocation9 + $0xf8] sm:$0xff] %v848_v14  ;;  %v627_v15 = vpop.f32.mrb[31].mxu1 }
 0x241   :  { %668 = vst [vmem:[#allocation9 + $0xe8] sm:$0xff] %v627_v15 }
 0x242   :  { %950 = shalt.err (!%p947_p0)
}
 0x243   :  { %s951_s27 = scalar_lea.hbm %s1058_s3, 4096 }
 0x244   :  { %p952_p1 = scmp.ne.s32.totalorder %s1058_s3, %s951_s27  ;;  %p955_p2 = scmp.lt.u32.totalorder %s951_s27, %s1058_s3 }
 0x246   :  { %p957_p3 = pnand %p955_p2, %p952_p1 }
 0x248   :  { %960 = shalt.err (!%p957_p3)
}
 0x249   :  { %682 = dma.vmem_to_hbm [thread:$0]  %s677_s22, 4096, %s1058_s3, [#allocation5], %s971_s1, %s971_s1, %s972_s9  }
 0x24a   :  { %965 = dma.done.wait [#allocation5], 4096  }
 0x24b   :  { %966 = vsyncadd [#allocation5], 4294963200 }
 0x24c   :  { %686 = vsyncpa [#allocation4], 1 }
 0x24d   :  { %687 = vsyncpa [#allocation7], 1 }
 0x24e   :  { %688 = vsyncpa [#allocation5], 1 }

</bundles_post_ra>
